<compile_context>
chip_gen: v7x
topology: tpu7x:2x2x1
jax: 0.10.0
libtpu: 0.0.40
codegen_flags: <defaults>
</compile_context>

<pallas_src>
import jax
import jax.numpy as jnp
from jax.experimental import pallas as pl
from jax.experimental.pallas import tpu as pltpu

_EPS = 1e-9
_DEFAULT_X_TILE_BYTES = 10 * 1024 * 1024     # per-buffer x tile (Pallas double-buffers it)
_MIN_PARALLEL_TILE_BYTES = 4 * 1024 * 1024   # keep tiles big when splitting for megacore


def _largest_divisor(n: int, cap: int) -> int:
    cap = max(1, min(n, cap))
    for d in range(cap, 0, -1):
        if n % d == 0:
            return d
    return 1


def _plan_tiles(B: int, S: int, H: int, itemsize: int, budget: int):
    """Choose (tb, ts, th, s_pad) respecting the TPU (8, 128) block rules."""
    # Hidden (lane) tile: full H when it fits the budget at the minimal seq tile,
    # otherwise the largest multiple-of-128 divisor that does.
    if H % 128 == 0:
        cands = [c for c in range(128, H + 1, 128)
                 if H % c == 0 and 128 * c * itemsize <= budget]
        th = max(cands) if cands else 128
    else:
        th = H  # full-H block: a last dim equal to the array dim is always legal
    # Sequence (reduction) tile; S is padded to a multiple of 128 by the wrapper.
    s_pad = (-S) % 128
    S_p = S + s_pad
    cands = [c for c in range(128, S_p + 1, 128)
             if S_p % c == 0 and c * th * itemsize <= budget]
    ts = max(cands) if cands else 128
    # Batch tile: fill the remaining budget (leading block dim -> no alignment rule).
    tb = _largest_divisor(B, budget // max(1, ts * th * itemsize))
    # v7x megacore: prefer >=2 blocks along the parallel axes so both TensorCores
    # get work, as long as tiles stay large enough that single-core chips lose nothing.
    if (B // tb) * (H // th) < 2 and tb > 1:
        smaller = _largest_divisor(B, tb // 2)
        if smaller < tb and smaller * ts * th * itemsize >= _MIN_PARALLEL_TILE_BYTES:
            tb = smaller
    return tb, ts, th, s_pad


def _masked_mean_kernel(x_ref, m_ref, inv_ref, o_ref, acc_ref):
    """One grid step handles a (tb, ts, th) slab of (batch, seq, hidden).

    x_ref:   (tb, ts, th)  hidden states, native dtype
    m_ref:   (tb, 1, ts)   mask in x's dtype (0/1)
    inv_ref: (tb, 1, 1)    precomputed 1 / max(sum_s mask, eps), f32
    o_ref:   (tb, 1, th)   output slab (written only on the last seq step)
    acc_ref: (tb, 1, th)   f32 numerator accumulator (VMEM scratch)
    """
    si = pl.program_id(2)

    @pl.when(si == 0)
    def _init():
        acc_ref[...] = jnp.zeros_like(acc_ref)

    if jnp.dtype(x_ref.dtype).itemsize <= 2:
        # 16-bit inputs: batched matmul on the MXU (vector-extended slot,
        # otherwise idle).  Exact for 0/1 masks; accumulates in f32.
        acc_ref[...] += jax.lax.dot_general(
            m_ref[...], x_ref[...],
            dimension_numbers=(((2,), (1,)), ((0,), (0,))),
            preferred_element_type=jnp.float32)
    else:
        # 32-bit inputs: exact VPU multiply-add; still HBM-bound at 4 B/elem.
        xf = x_ref[...].astype(jnp.float32)                      # (tb, ts, th)
        mf = m_ref[...][:, 0, :].astype(jnp.float32)             # (tb, ts)
        acc_ref[...] += jnp.sum(xf * mf[:, :, None], axis=1, keepdims=True)

    @pl.when(si == pl.num_programs(2) - 1)
    def _finalize():
        o_ref[...] = (acc_ref[...] * inv_ref[...]).astype(o_ref.dtype)


def aggregator_forward(x: jax.Array, mask: jax.Array, dtype_marker: jax.Array,
                       *, x_tile_bytes: int = _DEFAULT_X_TILE_BYTES) -> jax.Array:
    """Masked mean pooling aggregator.

    Args:
      x:    (B, S, H) hidden states, any float dtype (streamed natively).
      mask: (B, S) attention mask (1 = keep, 0 = pad); bool / int / float.
      dtype_marker: the module's `_dtype_marker` parameter; selects out dtype.
      x_tile_bytes: per-buffer VMEM budget for the x tile.

    Returns:
      (B, H) pooled representation in `dtype_marker.dtype`.
    """
    B, S, H = x.shape
    itemsize = jnp.dtype(x.dtype).itemsize

    # Denominator once in the wrapper: removes the per-step cross-lane sum.
    mask_f = mask.astype(jnp.float32)
    inv = (1.0 / jnp.maximum(jnp.sum(mask_f, axis=1), _EPS)).reshape(B, 1, 1)

    # Mask as the matmul LHS, in x's dtype (exact for 0/1 masks; keep x in f32
    # if exact soft-mask weighting is required).
    m_in = mask.astype(x.dtype).reshape(B, 1, S)

    tb, ts, th, s_pad = _plan_tiles(B, S, H, itemsize, x_tile_bytes)
    if s_pad:
        # Zero padding along the sequence axis is numerically a no-op (mask = 0).
        x = jnp.pad(x, ((0, 0), (0, s_pad), (0, 0)))
        m_in = jnp.pad(m_in, ((0, 0), (0, 0), (0, s_pad)))
    S_p = S + s_pad
    grid = (B // tb, H // th, S_p // ts)

    x_tile_actual = tb * ts * th * itemsize
    vmem_limit = int(max(48 * 1024 * 1024, 2 * x_tile_actual + 16 * 1024 * 1024))

    out3 = pl.pallas_call(
        _masked_mean_kernel,
        out_shape=jax.ShapeDtypeStruct((B, 1, H), dtype_marker.dtype),
        grid_spec=pltpu.PrefetchScalarGridSpec(
            num_scalar_prefetch=0,
            grid=grid,
            in_specs=[
                pl.BlockSpec((tb, ts, th), lambda bi, hi, si: (bi, si, hi)),
                pl.BlockSpec((tb, 1, ts), lambda bi, hi, si: (bi, 0, si)),
                pl.BlockSpec((tb, 1, 1), lambda bi, hi, si: (bi, 0, 0)),
            ],
            out_specs=pl.BlockSpec((tb, 1, th), lambda bi, hi, si: (bi, 0, hi)),
            scratch_shapes=[pltpu.VMEM((tb, 1, th), jnp.float32)],
        ),
        compiler_params=pltpu.CompilerParams(
            dimension_semantics=("parallel", "parallel", "arbitrary"),
            vmem_limit_bytes=vmem_limit,
        ),
    )(x, m_in, inv)
    return out3.reshape(B, H)


def aggregator_reference(x, mask):
    """Plain-JAX reference for correctness checking."""
    xf = x.astype(jnp.float32)
    mf = mask.astype(jnp.float32)[..., None]
    num = jnp.sum(xf * mf, axis=1)
    den = jnp.maximum(jnp.sum(mf, axis=1), _EPS)
    return num / den


if __name__ == "__main__":
    key = jax.random.PRNGKey(0)
    kx, km, kx2, km2 = jax.random.split(key, 4)

    # Deterministic parameter init mirroring `torch.zeros(1)` (_dtype_marker).
    dtype_marker = jnp.zeros((1,), dtype=jnp.float32)

    # --- small f32 case: unaligned S (exercises S padding + full-H block) ---
    B, S, H = 2, 8, 32
    x = jax.random.normal(kx, (B, S, H), dtype=jnp.float32)
    mask = (jax.random.uniform(km, (B, S)) > 0.3).astype(jnp.float32)
    mask = mask.at[:, 0].set(1.0)  # at least one valid token per row

    out = jax.block_until_ready(aggregator_forward(x, mask, dtype_marker))
    ref = aggregator_reference(x, mask)
    assert out.shape == (B, H), out.shape
    assert jnp.allclose(out, ref, atol=1e-5, rtol=1e-5), "f32 mismatch vs reference"

    # --- bf16 case, default tiles: MXU path, tb>1 per step ------------------
    B2, S2, H2 = 16, 512, 256
    x2 = jax.random.normal(kx2, (B2, S2, H2), dtype=jnp.float32).astype(jnp.bfloat16)
    mask2 = (jax.random.uniform(km2, (B2, S2)) > 0.3).astype(jnp.float32)
    mask2 = mask2.at[:, 0].set(1.0)

    out2 = jax.block_until_ready(aggregator_forward(x2, mask2, dtype_marker))
    ref2 = aggregator_reference(x2, mask2)
    assert out2.shape == (B2, H2), out2.shape
    assert jnp.allclose(out2, ref2, atol=2e-4, rtol=2e-4), "bf16 mismatch vs reference"

    # --- same data, tiny tile budget: exercises H tiling + multi-step seq ---
    out3 = jax.block_until_ready(
        aggregator_forward(x2, mask2, dtype_marker, x_tile_bytes=32 * 1024))
    assert jnp.allclose(out3, ref2, atol=2e-4, rtol=2e-4), "tiled-path mismatch vs reference"

    print("KERNEL_OK")
</pallas_src>

<mosaic_0001>
module attributes {stable_mosaic.version = 11 : i64} {
  func.func @_masked_mean_kernel(%arg0: i32, %arg1: i32, %arg2: i32, %arg3: memref<2x128x32xf32, #tpu.memory_space<vmem>>, %arg4: memref<2x1x128xf32, #tpu.memory_space<vmem>>, %arg5: memref<2x1x1xf32, #tpu.memory_space<vmem>>, %arg6: memref<2x1x32xf32, #tpu.memory_space<vmem>>, %arg7: memref<2x1x32xf32, #tpu.memory_space<vmem>>) attributes {dimension_semantics = [#tpu.dimension_semantics<parallel>, #tpu.dimension_semantics<parallel>, #tpu.dimension_semantics<arbitrary>], iteration_bounds = array<i64: 1, 1, 1>, scalar_prefetch = 0 : i64, scratch_operands = 1 : i64, tpu.core_type = #tpu.core_type<tc>, window_params = [{transform_indices = @transform_0, window_bounds = array<i64: 2, 128, 32>}, {transform_indices = @transform_1, window_bounds = array<i64: 2, 1, 128>}, {transform_indices = @transform_2, window_bounds = array<i64: 2, 1, 1>}, {transform_indices = @transform_3, window_bounds = array<i64: 2, 1, 32>}]} {
    %c0_i32 = arith.constant 0 : i32
    %0 = arith.cmpi eq, %arg2, %c0_i32 : i32
    %1 = arith.extui %0 : i1 to i32
    %c0_i32_0 = arith.constant 0 : i32
    %2 = arith.cmpi ne, %1, %c0_i32_0 : i32
    scf.if %2 {
      %cst_14 = arith.constant 0.000000e+00 : f32
      %17 = vector.broadcast %cst_14 : f32 to vector<2x1x32xf32>
      %c0_15 = arith.constant 0 : index
      %c0_16 = arith.constant 0 : index
      %c0_17 = arith.constant 0 : index
      %18 = vector.load %arg7[%c0_15, %c0_16, %c0_17] : memref<2x1x32xf32, #tpu.memory_space<vmem>>, vector<2x1x32xf32>
      tpu.vector_store %arg7[%c0_15, %c0_16, %c0_17], %17 {strides = array<i32>} : memref<2x1x32xf32, #tpu.memory_space<vmem>>, vector<2x1x32xf32>,
    } else {
    }
    %c0 = arith.constant 0 : index
    %c0_1 = arith.constant 0 : index
    %c0_2 = arith.constant 0 : index
    %3 = vector.load %arg3[%c0, %c0_1, %c0_2] : memref<2x128x32xf32, #tpu.memory_space<vmem>>, vector<2x128x32xf32>
    %c0_3 = arith.constant 0 : index
    %c0_4 = arith.constant 0 : index
    %c0_5 = arith.constant 0 : index
    %4 = vector.load %arg4[%c0_3, %c0_4, %c0_5] : memref<2x1x128xf32, #tpu.memory_space<vmem>>, vector<2x1x128xf32>
    %5 = vector.shape_cast %4 : vector<2x1x128xf32> to vector<2x128xf32>
    %c0_6 = arith.constant 0 : index
    %c0_7 = arith.constant 0 : index
    %c0_8 = arith.constant 0 : index
    %6 = vector.load %arg7[%c0_6, %c0_7, %c0_8] : memref<2x1x32xf32, #tpu.memory_space<vmem>>, vector<2x1x32xf32>
    %7 = vector.shape_cast %5 : vector<2x128xf32> to vector<2x128x1xf32>
    %8 = vector.broadcast %7 : vector<2x128x1xf32> to vector<2x128x32xf32>
    %9 = arith.mulf %3, %8 : vector<2x128x32xf32>
    %cst = arith.constant dense<0.000000e+00> : vector<2x32xf32>
    %10 = vector.multi_reduction <add>, %9, %cst [1] : vector<2x128x32xf32> to vector<2x32xf32>
    %11 = vector.shape_cast %10 : vector<2x32xf32> to vector<2x1x32xf32>
    %12 = arith.addf %6, %11 : vector<2x1x32xf32>
    %c0_9 = arith.constant 0 : index
    %c0_10 = arith.constant 0 : index
    %c0_11 = arith.constant 0 : index
    %13 = vector.load %arg7[%c0_9, %c0_10, %c0_11] : memref<2x1x32xf32, #tpu.memory_space<vmem>>, vector<2x1x32xf32>
    tpu.vector_store %arg7[%c0_9, %c0_10, %c0_11], %12 {strides = array<i32>} : memref<2x1x32xf32, #tpu.memory_space<vmem>>, vector<2x1x32xf32>,
    %c0_i32_12 = arith.constant 0 : i32
    %14 = arith.cmpi eq, %arg2, %c0_i32_12 : i32
    %15 = arith.extui %14 : i1 to i32
    %c0_i32_13 = arith.constant 0 : i32
    %16 = arith.cmpi ne, %15, %c0_i32_13 : i32
    scf.if %16 {
      %c0_14 = arith.constant 0 : index
      %c0_15 = arith.constant 0 : index
      %c0_16 = arith.constant 0 : index
      %17 = vector.load %arg7[%c0_14, %c0_15, %c0_16] : memref<2x1x32xf32, #tpu.memory_space<vmem>>, vector<2x1x32xf32>
      %c0_17 = arith.constant 0 : index
      %c0_18 = arith.constant 0 : index
      %c0_19 = arith.constant 0 : index
      %18 = vector.load %arg5[%c0_17, %c0_18, %c0_19] : memref<2x1x1xf32, #tpu.memory_space<vmem>>, vector<2x1x1xf32>
      %19 = vector.broadcast %18 : vector<2x1x1xf32> to vector<2x1x32xf32>
      %20 = arith.mulf %17, %19 : vector<2x1x32xf32>
      %c0_20 = arith.constant 0 : index
      %c0_21 = arith.constant 0 : index
      %c0_22 = arith.constant 0 : index
      %21 = vector.load %arg6[%c0_20, %c0_21, %c0_22] : memref<2x1x32xf32, #tpu.memory_space<vmem>>, vector<2x1x32xf32>
      tpu.vector_store %arg6[%c0_20, %c0_21, %c0_22], %20 {strides = array<i32>} : memref<2x1x32xf32, #tpu.memory_space<vmem>>, vector<2x1x32xf32>,
    } else {
    }
    return
  }
  func.func @transform_0(%arg0: i32, %arg1: i32, %arg2: i32) -> (i32, i32, i32) {
    %c0_i32 = arith.constant 0 : i32
    return %arg0, %arg2, %arg1 : i32, i32, i32
  }
  func.func @transform_1(%arg0: i32, %arg1: i32, %arg2: i32) -> (i32, i32, i32) {
    %c0_i32 = arith.constant 0 : i32
    %c0_i32_0 = arith.constant 0 : i32
    return %arg0, %c0_i32, %arg2 : i32, i32, i32
  }
  func.func @transform_2(%arg0: i32, %arg1: i32, %arg2: i32) -> (i32, i32, i32) {
    %c0_i32 = arith.constant 0 : i32
    %c0_i32_0 = arith.constant 0 : i32
    %c0_i32_1 = arith.constant 0 : i32
    return %arg0, %c0_i32, %c0_i32_0 : i32, i32, i32
  }
  func.func @transform_3(%arg0: i32, %arg1: i32, %arg2: i32) -> (i32, i32, i32) {
    %c0_i32 = arith.constant 0 : i32
    %c0_i32_0 = arith.constant 0 : i32
    return %arg0, %c0_i32, %arg1 : i32, i32, i32
  }
}

</mosaic_0001>

<bundles_post_ra>
// kernel: tpu_custom_call.1
= control target key start
LH: loop header
LB: loop body
LE: loop exit
PB: predicated region body
PF: predicated region fallthrough
CT: control target
= control target key end

     0   :  { %v382_v2 = vmov 0   ;;  %s565_s0 = inlined_call_operand.vmem [shape: f32[2,128,32], index: 0, kind: input, shape index: {}]   ;;  %s566_s1 = inlined_call_operand.vmem [shape: f32[2,1,128], index: 1, kind: input, shape index: {}]   ;;  %s567_s2 = inlined_call_operand.vmem [shape: f32[2,1,1], index: 2, kind: input, shape index: {}]   ;;  %s568_s3 = inlined_call_operand.hbm [shape: f32[2,1,32], index: 3, kind: output, shape index: {}]  }
   0x1   :  { %v350_v0 = vld [vmem:[%s566_s1 + $0x1] ss:$0 sm:$0xff]  ;;  %v349_v1 = vld [vmem:[%s566_s1] ss:$0 sm:$0xff]  ;;  %357 = vset.pattern.permute.xlu1 %v382_v2  ;;  %356 = vset.pattern.permute.xlu0 %v382_v2 }
   0x2   :  { %130 = vbcast.lane.b32.xlu1 %v350_v0, 256  ;;  %63 = vbcast.lane.b32.xlu0 %v349_v1, 256 }
   0x6   :  { %134 = vbcast.lane.b32.xlu1 %v350_v0, 264  ;;  %67 = vbcast.lane.b32.xlu0 %v349_v1, 264 }
   0x7   :  { %8 = vsyncpa [#allocation4], 0  ;;  %vm19_vm0 = vcmask 253952   ;;  %v383_v3 = vmov 0.0   ;;  %v310_v4 = vld [vmem:[%s567_s2 + $0x1] sm:$0x1] }
   0x8   :  { %21 = vst.msk [vmem:[#allocation2 + $0x1] sm:$0x1] %vm19_vm0, %v383_v3  ;;  %20 = vst.msk [vmem:[#allocation2] sm:$0x1] %vm19_vm0, %v383_v3  ;;  %v309_v5 = vld [vmem:[%s567_s2] sm:$0x1] }
   0x9   :  { %v39_v20 = vld [vmem:[%s565_s0 + $0x88] sm:$0xff]  ;;  %v38_v22 = vld [vmem:[%s565_s0 + $0x80] sm:$0xff]  ;;  %v40_v24 = vld [vmem:[%s565_s0 + $0x90] sm:$0xff]  ;;  %vm224_vm1 = vcmask 261120  }
   0xa   :  { %138 = vbcast.lane.b32.xlu1 %v350_v0, 272  ;;  %71 = vbcast.lane.b32.xlu0 %v349_v1, 272  ;;  %v23_v21 = vld [vmem:[%s565_s0 + $0x8] sm:$0xff]  ;;  %v22_v23 = vld [vmem:[%s565_s0] sm:$0xff]  ;;  %v24_v25 = vld [vmem:[%s565_s0 + $0x10] sm:$0xff] }
   0xb   :  { %v41_v32 = vld [vmem:[%s565_s0 + $0x98] sm:$0xff]  ;;  %v42_v36 = vld [vmem:[%s565_s0 + $0xa0] sm:$0xff]  ;;  %v43_v46 = vld [vmem:[%s565_s0 + $0xa8] sm:$0xff] }
   0xc   :  { %v25_v33 = vld [vmem:[%s565_s0 + $0x18] sm:$0xff]  ;;  %v26_v37 = vld [vmem:[%s565_s0 + $0x20] sm:$0xff]  ;;  %v27_v47 = vld [vmem:[%s565_s0 + $0x28] sm:$0xff] }
   0xd   :  { %v44_v54 = vld [vmem:[%s565_s0 + $0xb0] sm:$0xff] }
   0xe   :  { %142 = vbcast.lane.b32.xlu1 %v350_v0, 280  ;;  %75 = vbcast.lane.b32.xlu0 %v349_v1, 280  ;;  %v28_v55 = vld [vmem:[%s565_s0 + $0x30] sm:$0xff] }
  0x12   :  { %146 = vbcast.lane.b32.xlu1 %v350_v0, 288  ;;  %79 = vbcast.lane.b32.xlu0 %v349_v1, 288 }
  0x16   :  { %150 = vbcast.lane.b32.xlu1 %v350_v0, 296  ;;  %83 = vbcast.lane.b32.xlu0 %v349_v1, 296 }
  0x1a   :  { %154 = vbcast.lane.b32.xlu1 %v350_v0, 304  ;;  %87 = vbcast.lane.b32.xlu0 %v349_v1, 304 }
  0x1e   :  { %158 = vbcast.lane.b32.xlu1 %v350_v0, 312  ;;  %91 = vbcast.lane.b32.xlu0 %v349_v1, 312 }
  0x22   :  { %162 = vbcast.lane.b32.xlu1 %v350_v0, 320  ;;  %95 = vbcast.lane.b32.xlu0 %v349_v1, 320 }
  0x26   :  { %166 = vbcast.lane.b32.xlu1 %v350_v0, 328  ;;  %99 = vbcast.lane.b32.xlu0 %v349_v1, 328 }
  0x2a   :  { %170 = vbcast.lane.b32.xlu1 %v350_v0, 336  ;;  %103 = vbcast.lane.b32.xlu0 %v349_v1, 336 }
  0x2e   :  { %174 = vbcast.lane.b32.xlu1 %v350_v0, 344  ;;  %107 = vbcast.lane.b32.xlu0 %v349_v1, 344 }
  0x32   :  { %178 = vbcast.lane.b32.xlu1 %v350_v0, 352  ;;  %111 = vbcast.lane.b32.xlu0 %v349_v1, 352 }
  0x36   :  { %182 = vbcast.lane.b32.xlu1 %v350_v0, 360  ;;  %115 = vbcast.lane.b32.xlu0 %v349_v1, 360 }
  0x3a   :  { %186 = vbcast.lane.b32.xlu1 %v350_v0, 368  ;;  %119 = vbcast.lane.b32.xlu0 %v349_v1, 368 }
  0x3e   :  { %190 = vbcast.lane.b32.xlu1 %v350_v0, 376  ;;  %123 = vbcast.lane.b32.xlu0 %v349_v1, 376  ;;  %v45_v0 = vld [vmem:[%s565_s0 + $0xb8] sm:$0xff] }
  0x3f   :  { %v29_v1 = vld [vmem:[%s565_s0 + $0x38] sm:$0xff] }
  0x42   :  { %322 = vperm.xlu1 %357, %v310_v4   ;;  %313 = vperm.xlu0 %356, %v309_v5  }
  0x74   :  { %v131_v6 = vpop.permute.xlu1 %130  ;;  %v64_v7 = vpop.permute.xlu0 %63 }
  0x75   :  { %v208_v30 = vmul.f32 %v131_v6, %v38_v22  ;;  %v192_v31 = vmul.f32 %v64_v7, %v22_v23 }
  0x77   :  { %v262_v44 = vsel %vm224_vm1, %v208_v30, 0.0  ;;  %v225_v45 = vsel %vm224_vm1, %v192_v31, 0.0 }
  0x78   :  { %v135_v8 = vpop.permute.xlu1 %134  ;;  %v68_v9 = vpop.permute.xlu0 %67 }
  0x79   :  { %v209_v28 = vmul.f32 %v135_v8, %v39_v20  ;;  %v193_v29 = vmul.f32 %v68_v9, %v23_v21  ;;  %v46_v8 = vld [vmem:[%s565_s0 + $0xc0] sm:$0xff] }
  0x7a   :  { %v30_v9 = vld [vmem:[%s565_s0 + $0x40] sm:$0xff] }
  0x7b   :  { %v263_v40 = vsel %vm224_vm1, %v209_v28, 0.0  ;;  %v226_v41 = vsel %vm224_vm1, %v193_v29, 0.0 }
  0x7c   :  { %v139_v10 = vpop.permute.xlu1 %138  ;;  %v72_v11 = vpop.permute.xlu0 %71  ;;  %v264_v52 = vadd.f32 %v263_v40, %v262_v44  ;;  %v227_v53 = vadd.f32 %v226_v41, %v225_v45  ;;  %v50_v45 = vld [vmem:[%s565_s0 + $0xe0] sm:$0xff] }
  0x7d   :  { %v210_v34 = vmul.f32 %v139_v10, %v40_v24  ;;  %v194_v35 = vmul.f32 %v72_v11, %v24_v25 }
  0x7f   :  { %v265_v48 = vsel %vm224_vm1, %v210_v34, 0.0  ;;  %v228_v49 = vsel %vm224_vm1, %v194_v35, 0.0 }
  0x80   :  { %v143_v12 = vpop.permute.xlu1 %142  ;;  %v76_v13 = vpop.permute.xlu0 %75  ;;  %v266_v62 = vadd.f32 %v265_v48, %v264_v52  ;;  %v229_v63 = vadd.f32 %v228_v49, %v227_v53 }
  0x81   :  { %v211_v42 = vmul.f32 %v143_v12, %v41_v32  ;;  %v195_v43 = vmul.f32 %v76_v13, %v25_v33 }
  0x83   :  { %v267_v58 = vsel %vm224_vm1, %v211_v42, 0.0  ;;  %v230_v59 = vsel %vm224_vm1, %v195_v43, 0.0 }
  0x84   :  { %v147_v14 = vpop.permute.xlu1 %146  ;;  %v80_v15 = vpop.permute.xlu0 %79  ;;  %v268_v6 = vadd.f32 %v267_v58, %v266_v62  ;;  %v231_v7 = vadd.f32 %v230_v59, %v229_v63 }
  0x85   :  { %v212_v50 = vmul.f32 %v147_v14, %v42_v36  ;;  %v196_v51 = vmul.f32 %v80_v15, %v26_v37  ;;  %v49_v36 = vld [vmem:[%s565_s0 + $0xd8] sm:$0xff] }
  0x86   :  { %v33_v37 = vld [vmem:[%s565_s0 + $0x58] sm:$0xff] }
  0x87   :  { %v269_v2 = vsel %vm224_vm1, %v212_v50, 0.0  ;;  %v232_v3 = vsel %vm224_vm1, %v196_v51, 0.0 }
  0x88   :  { %v151_v16 = vpop.permute.xlu1 %150  ;;  %v84_v17 = vpop.permute.xlu0 %83 }
  0x89   :  { %v213_v60 = vmul.f32 %v151_v16, %v43_v46  ;;  %v197_v61 = vmul.f32 %v84_v17, %v27_v47  ;;  %v270_v16 = vadd.f32 %v269_v2, %v268_v6  ;;  %v233_v17 = vadd.f32 %v232_v3, %v231_v7  ;;  %v34_v47 = vld [vmem:[%s565_s0 + $0x60] sm:$0xff]  ;;  %v52_v6 = vld [vmem:[%s565_s0 + $0xf0] sm:$0xff] }
  0x8a   :  { %v36_v7 = vld [vmem:[%s565_s0 + $0x70] sm:$0xff] }
  0x8b   :  { %v271_v12 = vsel %vm224_vm1, %v213_v60, 0.0  ;;  %v234_v13 = vsel %vm224_vm1, %v197_v61, 0.0 }
  0x8c   :  { %v155_v18 = vpop.permute.xlu1 %154  ;;  %v88_v19 = vpop.permute.xlu0 %87  ;;  %v272_v24 = vadd.f32 %v271_v12, %v270_v16  ;;  %v235_v25 = vadd.f32 %v234_v13, %v233_v17 }
  0x8d   :  { %v214_v4 = vmul.f32 %v155_v18, %v44_v54  ;;  %v198_v5 = vmul.f32 %v88_v19, %v28_v55  ;;  %v47_v18 = vld [vmem:[%s565_s0 + $0xc8] sm:$0xff] }
  0x8e   :  { %v31_v19 = vld [vmem:[%s565_s0 + $0x48] sm:$0xff] }
  0x8f   :  { %v273_v20 = vsel %vm224_vm1, %v214_v4, 0.0  ;;  %v236_v21 = vsel %vm224_vm1, %v198_v5, 0.0  ;;  %v51_v54 = vld [vmem:[%s565_s0 + $0xe8] sm:$0xff] }
  0x90   :  { %v159_v26 = vpop.permute.xlu1 %158  ;;  %v92_v27 = vpop.permute.xlu0 %91  ;;  %v274_v34 = vadd.f32 %v273_v20, %v272_v24  ;;  %v237_v35 = vadd.f32 %v236_v21, %v235_v25  ;;  %v35_v55 = vld [vmem:[%s565_s0 + $0x68] sm:$0xff]  ;;  %v53_v20 = vld [vmem:[%s565_s0 + $0xf8] sm:$0xff] }
  0x91   :  { %v215_v14 = vmul.f32 %v159_v26, %v45_v0  ;;  %v199_v15 = vmul.f32 %v92_v27, %v29_v1  ;;  %v48_v26 = vld [vmem:[%s565_s0 + $0xd0] sm:$0xff]  ;;  %v37_v21 = vld [vmem:[%s565_s0 + $0x78] sm:$0xff] }
  0x92   :  { %v32_v27 = vld [vmem:[%s565_s0 + $0x50] sm:$0xff]  ;;  %s384_s0 = smov [#allocation3]  }
  0x93   :  { %v275_v30 = vsel %vm224_vm1, %v215_v14, 0.0  ;;  %v238_v31 = vsel %vm224_vm1, %v199_v15, 0.0  ;;  %s338_s24 = sshll.u32 %s384_s0, 4  ;;  %s339_s24 = int_to_ptr.vmem [resolvable:$true] %s338_s24 }
  0x94   :  { %v163_v38 = vpop.permute.xlu1 %162  ;;  %v96_v39 = vpop.permute.xlu0 %95  ;;  %v276_v42 = vadd.f32 %v275_v30, %v274_v34  ;;  %v239_v43 = vadd.f32 %v238_v31, %v237_v35  ;;  %s358_s25 = scalar_lea.vmem %s339_s24, 32  ;;  %p363_p1 = scmp.lt.s32.totalorder %s339_s24, %s339_s24 }
  0x95   :  { %v216_v22 = vmul.f32 %v163_v38, %v46_v8  ;;  %v200_v23 = vmul.f32 %v96_v39, %v30_v9  ;;  %p359_p0 = scmp.ne.s32.totalorder %s339_s24, %s358_s25  ;;  %p364_p2 = scmp.lt.s32.totalorder %s358_s25, %s358_s25 }
  0x97   :  { %v277_v38 = vsel %vm224_vm1, %v216_v22, 0.0  ;;  %v240_v39 = vsel %vm224_vm1, %v200_v23, 0.0  ;;  %p365_p3 = por %p364_p2, %p363_p1 }
  0x98   :  { %v167_v56 = vpop.permute.xlu1 %166  ;;  %v100_v57 = vpop.permute.xlu0 %99  ;;  %v278_v52 = vadd.f32 %v277_v38, %v276_v42  ;;  %v241_v53 = vadd.f32 %v240_v39, %v239_v43 }
  0x99   :  { %v217_v32 = vmul.f32 %v167_v56, %v47_v18  ;;  %v201_v33 = vmul.f32 %v100_v57, %v31_v19  ;;  %p366_p4 = pnand %p365_p3, %p359_p0 }
  0x9b   :  { %v279_v48 = vsel %vm224_vm1, %v217_v32, 0.0  ;;  %v242_v49 = vsel %vm224_vm1, %v201_v33, 0.0 }
  0x9c   :  { %v171_v10 = vpop.permute.xlu1 %170  ;;  %v104_v11 = vpop.permute.xlu0 %103  ;;  %v280_v60 = vadd.f32 %v279_v48, %v278_v52  ;;  %v243_v61 = vadd.f32 %v242_v49, %v241_v53  ;;  %v56_v48 = vld [vmem:[#allocation2] sm:$0x1] }
  0x9d   :  { %v218_v40 = vmul.f32 %v171_v10, %v48_v26  ;;  %v202_v41 = vmul.f32 %v104_v11, %v32_v27 }
  0x9f   :  { %v281_v56 = vsel %vm224_vm1, %v218_v40, 0.0  ;;  %v244_v57 = vsel %vm224_vm1, %v202_v41, 0.0 }
  0xa0   :  { %v175_v28 = vpop.permute.xlu1 %174  ;;  %v108_v29 = vpop.permute.xlu0 %107  ;;  %v282_v4 = vadd.f32 %v281_v56, %v280_v60  ;;  %v245_v5 = vadd.f32 %v244_v57, %v243_v61 }
  0xa1   :  { %v219_v50 = vmul.f32 %v175_v28, %v49_v36  ;;  %v203_v51 = vmul.f32 %v108_v29, %v33_v37 }
  0xa3   :  { %v283_v0 = vsel %vm224_vm1, %v219_v50, 0.0  ;;  %v246_v1 = vsel %vm224_vm1, %v203_v51, 0.0 }
  0xa4   :  { %v179_v44 = vpop.permute.xlu1 %178  ;;  %v112_v46 = vpop.permute.xlu0 %111  ;;  %v284_v10 = vadd.f32 %v283_v0, %v282_v4  ;;  %v247_v11 = vadd.f32 %v246_v1, %v245_v5 }
  0xa5   :  { %v220_v58 = vmul.f32 %v179_v44, %v50_v45  ;;  %v204_v59 = vmul.f32 %v112_v46, %v34_v47  ;;  %v316_v44 = vlaneseq  ;;  %v57_v47 = vld [vmem:[#allocation2 + $0x1] sm:$0x1] }
  0xa7   :  { %v285_v8 = vsel %vm224_vm1, %v220_v58, 0.0  ;;  %v248_v9 = vsel %vm224_vm1, %v204_v59, 0.0  ;;  %v317_v51 = vshrl.u32 %v316_v44, 7 }
  0xa8   :  { %v183_v62 = vpop.permute.xlu1 %182  ;;  %v116_v63 = vpop.permute.xlu0 %115  ;;  %v286_v18 = vadd.f32 %v285_v8, %v284_v10  ;;  %v249_v19 = vadd.f32 %v248_v9, %v247_v11 }
  0xa9   :  { %v221_v2 = vmul.f32 %v183_v62, %v51_v54  ;;  %v205_v3 = vmul.f32 %v116_v63, %v35_v55  ;;  %v318_v54 = vsub.s32 0, %v317_v51 }
  0xab   :  { %v287_v14 = vsel %vm224_vm1, %v221_v2, 0.0  ;;  %v250_v15 = vsel %vm224_vm1, %v205_v3, 0.0 }
  0xac   :  { %v187_v12 = vpop.permute.xlu1 %186  ;;  %v120_v13 = vpop.permute.xlu0 %119  ;;  %v288_v24 = vadd.f32 %v287_v14, %v286_v18  ;;  %v251_v25 = vadd.f32 %v250_v15, %v249_v19 }
  0xad   :  { %v222_v16 = vmul.f32 %v187_v12, %v52_v6  ;;  %v206_v17 = vmul.f32 %v120_v13, %v36_v7 }
  0xaf   :  { %v289_v22 = vsel %vm224_vm1, %v222_v16, 0.0  ;;  %v252_v23 = vsel %vm224_vm1, %v206_v17, 0.0 }
  0xb0   :  { %v191_v26 = vpop.permute.xlu1 %190  ;;  %v124_v27 = vpop.permute.xlu0 %123  ;;  %v290_v30 = vadd.f32 %v289_v22, %v288_v24  ;;  %v253_v31 = vadd.f32 %v252_v23, %v251_v25 }
  0xb1   :  { %v223_v28 = vmul.f32 %v191_v26, %v53_v20  ;;  %v207_v29 = vmul.f32 %v124_v27, %v37_v21 }
  0xb3   :  { %v291_v32 = vsel %vm224_vm1, %v223_v28, 0.0  ;;  %v254_v33 = vsel %vm224_vm1, %v207_v29, 0.0 }
  0xb4   :  { %v292_v34 = vadd.f32 %v291_v32, %v290_v30  ;;  %v255_v35 = vadd.f32 %v254_v33, %v253_v31 }
  0xb6   :  { %v293_v36 = vrot.slane %v292_v34, 4  ;;  %v256_v37 = vrot.slane %v255_v35, 4 }
  0xb8   :  { %v294_v38 = vadd.f32 %v293_v36, %v292_v34  ;;  %v257_v39 = vadd.f32 %v256_v37, %v255_v35 }
  0xba   :  { %v295_v40 = vrot.slane %v294_v38, 2  ;;  %v258_v41 = vrot.slane %v257_v39, 2 }
  0xbc   :  { %v296_v42 = vadd.f32 %v295_v40, %v294_v38  ;;  %v259_v43 = vadd.f32 %v258_v41, %v257_v39 }
  0xbe   :  { %v297_v45 = vrot.slane %v296_v42, 1  ;;  %v260_v46 = vrot.slane %v259_v43, 1 }
  0xc0   :  { %v298_v49 = vadd.f32 %v297_v45, %v296_v42  ;;  %v261_v50 = vadd.f32 %v260_v46, %v259_v43 }
  0xc1   :  { %v323_v55 = vpop.permute.xlu1 %322  ;;  %v314_v56 = vpop.permute.xlu0 %313 }
  0xc2   :  { %v300_v52 = vadd.f32 %v298_v49, %v57_v47  ;;  %v299_v53 = vadd.f32 %v261_v50, %v56_v48  ;;  %v328_v57 = vrot.slane %v323_v55, %v318_v54  ;;  %v319_v58 = vrot.slane %v314_v56, %v318_v54 }
  0xc4   :  { %303 = vst.msk [vmem:[#allocation2 + $0x1] sm:$0x1] %vm19_vm0, %v300_v52  ;;  %302 = vst.msk [vmem:[#allocation2] sm:$0x1] %vm19_vm0, %v299_v53 }
  0xcb   :  { %v308_v59 = vld [vmem:[#allocation2 + $0x1] sm:$0x1]  ;;  %v307_v60 = vld [vmem:[#allocation2] sm:$0x1] }
  0xcc   :  { %v330_v61 = vmul.f32 %v328_v57, %v308_v59  ;;  %v329_v62 = vmul.f32 %v319_v58, %v307_v60 }
  0xce   :  { %332 = vst.msk [vmem:[#allocation3 + $0x1] sm:$0x1] %vm19_vm0, %v330_v61  ;;  %331 = vst.msk [vmem:[#allocation3] sm:$0x1] %vm19_vm0, %v329_v62 }
  0xcf   :  { %369 = shalt.err (!%p366_p4)
}
  0xd0   :  { %s370_s28 = scalar_lea.hbm %s568_s3, 32 }
  0xd1   :  { %p371_p5 = scmp.ne.s32.totalorder %s568_s3, %s370_s28  ;;  %p374_p6 = scmp.lt.u32.totalorder %s370_s28, %s568_s3 }
  0xd3   :  { %p376_p7 = pnand %p374_p6, %p371_p5 }
  0xd5   :  { %379 = shalt.err (!%p376_p7)
}
  0xd6   :  { %s385_s6 = smov 16   ;;  %s386_s7 = smov 1  }
  0xd7   :  { %344 = dma.vmem_to_hbm [thread:$0]  %s339_s24, 32, %s568_s3, [#allocation4], %s385_s6, %s385_s6, %s386_s7  }
  0xd8   :  { %380 = dma.done.wait [#allocation4], 32  }
  0xd9   :  { %381 = vsyncadd [#allocation4], 4294967264 }
  0xda   :  { %348 = vsyncpa [#allocation4], 1 }

</bundles_post_ra>
